<compile_context>
chip_gen: v7x
topology: tpu7x:2x2x1
jax: 0.10.0
libtpu: 0.0.40
codegen_flags: <defaults>
</compile_context>

<pallas_src>
import jax
import jax.numpy as jnp
from jax.experimental import pallas as pl
from jax.experimental.pallas import tpu as pltpu


def _round_up(x, m):
    return ((x + m - 1) // m) * m


# ------------------------------ kernels -------------------------------------


def make_masked_kernel(seq_len, tile_s, ragged_s):
    """Masked mean pooling: grid = (batch_tiles, seq_tiles)."""

    def kernel(x_ref, m_ref, o_ref, acc_ref, cnt_ref):
        s = pl.program_id(1)

        @pl.when(s == 0)
        def _():
            acc_ref[...] = jnp.zeros_like(acc_ref)
            cnt_ref[...] = jnp.zeros_like(cnt_ref)

        x = x_ref[...].astype(jnp.float32)          # (TB, TS, H)
        m = m_ref[...].astype(jnp.float32)          # (TB, TS)

        if ragged_s:
            # Last S block reads past the array; zero OOB columns via select so
            # arbitrary (possibly NaN) padding never reaches the accumulator.
            col = jax.lax.broadcasted_iota(jnp.int32, m.shape, 1) + s * tile_s
            valid = col < seq_len
            m = jnp.where(valid, m, 0.0)
            x = jnp.where(valid[:, :, None], x, 0.0)

        acc_ref[...] += jnp.sum(x * m[:, :, None], axis=1)      # (TB, H)
        cnt_ref[...] += jnp.sum(m, axis=1, keepdims=True)       # (TB, 1)

        @pl.when(s == pl.num_programs(1) - 1)
        def _():
            denom = jnp.maximum(cnt_ref[...], jnp.float32(1e-9))  # torch.clamp(min=1e-9)
            inv = pl.reciprocal(denom, approx=False)               # exact parity
            o_ref[...] = (acc_ref[...] * inv).astype(o_ref.dtype)

    return kernel


def make_mean_kernel(seq_len, tile_s, ragged_s):
    """mask=None path: plain mean over the sequence axis (no mask stream)."""
    inv_s = 1.0 / float(seq_len)

    def kernel(x_ref, o_ref, acc_ref):
        s = pl.program_id(1)

        @pl.when(s == 0)
        def _():
            acc_ref[...] = jnp.zeros_like(acc_ref)

        x = x_ref[...].astype(jnp.float32)          # (TB, TS, H)
        if ragged_s:
            col = jax.lax.broadcasted_iota(jnp.int32, x.shape[:2], 1) + s * tile_s
            x = jnp.where((col < seq_len)[:, :, None], x, 0.0)

        acc_ref[...] += jnp.sum(x, axis=1)

        @pl.when(s == pl.num_programs(1) - 1)
        def _():
            o_ref[...] = (acc_ref[...] * jnp.float32(inv_s)).astype(o_ref.dtype)

    return kernel


# ------------------------------ sizing --------------------------------------


def _vmem_capacity_bytes():
    try:
        return int(pltpu.get_tpu_info().vmem_capacity_bytes)
    except Exception:
        # Conservative fallback (fits v7x's 64 MiB per TensorCore).
        return 64 * 1024 * 1024


def _batch_dim_semantics():
    # v7x has 2 TensorCores per chip; CORE_PARALLEL shards the batch grid across
    # them.  Neutral/unused on single-TC v5e/v6e where we keep PARALLEL.
    try:
        kind = jax.devices()[0].device_kind.lower()
    except Exception:
        kind = ""
    if "v7" in kind or "7x" in kind:
        return pltpu.CORE_PARALLEL
    return pltpu.PARALLEL


def _row_bytes(tile_s, hidden, x_itemsize):
    """Per-batch-row VMEM footprint, including lane/sublane padding, double
    buffering and the in-kernel f32 cast/product temporaries."""
    h_pad = _round_up(hidden, 128)       # lane padding of x / out / acc
    ts_sub = _round_up(tile_s, 8)        # sublane padding of the x slab
    ts_lane = _round_up(tile_s, 128)     # lane padding of the (TB, TS) mask
    x_tile = ts_sub * h_pad * x_itemsize
    m_tile = ts_lane * 4
    o_tile = h_pad * 4
    scratch = h_pad * 4 + 128 * 4        # acc + count
    temps = 2 * ts_sub * h_pad * 4       # f32 cast + (TB,TS,H) product
    return 2 * (x_tile + m_tile + o_tile) + scratch + temps


def _choose_tiles(batch, seq, hidden, x_itemsize, budget_bytes):
    """Largest (tile_b, tile_s) whose double-buffered footprint fits the budget."""
    # Candidate sequence tiles: full S first, then multiples of 128 going down.
    ts_cands = [seq]
    ts = min((seq // 128) * 128, 4096)
    while ts >= 128:
        if ts < seq:
            ts_cands.append(ts)
        ts //= 2

    tb_cap = min(_round_up(batch, 8), 2048)
    for ts in ts_cands:
        row = _row_bytes(ts, hidden, x_itemsize)
        if batch <= 8:
            if batch * row <= budget_bytes:
                return batch, int(ts)
            continue
        tb = (budget_bytes // row // 8) * 8
        tb = min(int(tb), tb_cap)
        if tb >= 8:
            return tb, int(ts)
    # Fallback: minimum legal tiles (relies on the granted vmem limit).
    return (batch if batch <= 8 else 8), int(ts_cands[-1])


# ------------------------------ wrapper -------------------------------------


def mean_pooler(inputs, mask=None, *, tile_b=None, tile_s=None):
    """inputs: [B, S, H]; mask: [B, S] or None -> (None, pooled [B, H])."""
    B, S, H = inputs.shape

    capacity = _vmem_capacity_bytes()
    vmem_limit = max(16 * 1024 * 1024, (capacity * 3) // 4)   # grant the budget
    budget = (vmem_limit * 3) // 5                            # double-buffered working set

    x_itemsize = jnp.dtype(inputs.dtype).itemsize
    tb, ts = _choose_tiles(B, S, H, x_itemsize, budget)
    if tile_b is not None:
        tb = int(tile_b)
    if tile_s is not None:
        ts = int(tile_s)

    nb = pl.cdiv(B, tb)
    ns = pl.cdiv(S, ts)
    ragged_s = (S % ts) != 0

    cparams = pltpu.CompilerParams(
        dimension_semantics=(_batch_dim_semantics(), pltpu.ARBITRARY),
        vmem_limit_bytes=int(vmem_limit),
    )

    if mask is None:
        # Plain mean over dim=1; output keeps the input dtype (matches torch).
        kernel = make_mean_kernel(S, ts, ragged_s)
        pooled = pl.pallas_call(
            kernel,
            out_shape=jax.ShapeDtypeStruct((B, H), inputs.dtype),
            grid_spec=pltpu.PrefetchScalarGridSpec(
                num_scalar_prefetch=0,
                grid=(nb, ns),
                in_specs=[pl.BlockSpec((tb, ts, H), lambda b, s: (b, s, 0))],
                out_specs=pl.BlockSpec((tb, H), lambda b, s: (b, 0)),
                scratch_shapes=[pltpu.VMEM((tb, H), jnp.float32)],
            ),
            compiler_params=cparams,
        )(inputs)
        return None, pooled

    # Masked path: torch promotes via mask.float(), so the output is >= f32.
    out_dtype = jnp.promote_types(inputs.dtype, jnp.float32)
    mask_f = mask.astype(jnp.float32)
    kernel = make_masked_kernel(S, ts, ragged_s)
    pooled = pl.pallas_call(
        kernel,
        out_shape=jax.ShapeDtypeStruct((B, H), out_dtype),
        grid_spec=pltpu.PrefetchScalarGridSpec(
            num_scalar_prefetch=0,
            grid=(nb, ns),
            in_specs=[
                pl.BlockSpec((tb, ts, H), lambda b, s: (b, s, 0)),
                pl.BlockSpec((tb, ts), lambda b, s: (b, s)),
            ],
            out_specs=pl.BlockSpec((tb, H), lambda b, s: (b, 0)),
            scratch_shapes=[
                pltpu.VMEM((tb, H), jnp.float32),   # sum_embeddings accumulator
                pltpu.VMEM((tb, 1), jnp.float32),   # sum_mask accumulator
            ],
        ),
        compiler_params=cparams,
    )(inputs, mask_f)
    return None, pooled


# ------------------------------ demo / check --------------------------------


if __name__ == "__main__":
    key = jax.random.PRNGKey(0)
    k0, k1 = jax.random.split(key)

    # Small config consistent with the module: [batch, seq, hidden].
    batch, seq, hidden = 2, 8, 32
    inputs = jax.random.normal(k0, (batch, seq, hidden), dtype=jnp.float32)
    mask = jnp.array(
        [[1, 1, 1, 1, 1, 0, 0, 0],
         [1, 1, 1, 1, 1, 1, 1, 1]], dtype=jnp.float32)

    # Masked path.
    _, pooled = mean_pooler(inputs, mask)
    pooled = jax.block_until_ready(pooled)

    # No-mask path (plain mean over dim=1, dedicated kernel).
    _, pooled_nomask = mean_pooler(inputs, None)
    pooled_nomask = jax.block_until_ready(pooled_nomask)

    # Pure-JAX references.
    m_exp = mask[:, :, None]
    ref_masked = jnp.sum(inputs * m_exp, axis=1) / jnp.clip(
        jnp.sum(m_exp, axis=1), 1e-9, None)
    ref_mean = jnp.mean(inputs, axis=1)

    assert pooled.shape == (batch, hidden)
    assert pooled_nomask.shape == (batch, hidden)
    assert jnp.allclose(pooled, ref_masked, atol=1e-5, rtol=1e-5)
    assert jnp.allclose(pooled_nomask, ref_mean, atol=1e-5, rtol=1e-5)

    # Ragged batch tile + ragged sequence tile (multi-step accumulator path).
    B2, S2, H2 = 12, 200, 256
    k2, k3 = jax.random.split(k1)
    x2 = jax.random.normal(k2, (B2, S2, H2), dtype=jnp.float32)
    m2 = (jax.random.uniform(k3, (B2, S2)) > 0.3).astype(jnp.float32)
    _, pooled2 = mean_pooler(x2, m2, tile_b=8, tile_s=128)
    pooled2 = jax.block_until_ready(pooled2)
    ref2 = jnp.sum(x2 * m2[:, :, None], axis=1) / jnp.clip(
        jnp.sum(m2, axis=1, keepdims=True), 1e-9, None)
    assert pooled2.shape == (B2, H2)
    assert jnp.allclose(pooled2, ref2, atol=1e-4, rtol=1e-4)

    print("KERNEL_OK")
</pallas_src>

<mosaic_0001>
module attributes {stable_mosaic.version = 11 : i64} {
  func.func @kernel(%arg0: i32, %arg1: i32, %arg2: memref<2x8x32xf32, #tpu.memory_space<vmem>>, %arg3: memref<2x8xf32, #tpu.memory_space<vmem>>, %arg4: memref<2x32xf32, #tpu.memory_space<vmem>>, %arg5: memref<2x32xf32, #tpu.memory_space<vmem>>, %arg6: memref<2x1xf32, #tpu.memory_space<vmem>>) attributes {dimension_semantics = [#tpu.dimension_semantics<parallel>, #tpu.dimension_semantics<arbitrary>], iteration_bounds = array<i64: 1, 1>, scalar_prefetch = 0 : i64, scratch_operands = 2 : i64, tpu.core_type = #tpu.core_type<tc>, window_params = [{transform_indices = @transform_0, window_bounds = array<i64: 2, 8, 32>}, {transform_indices = @transform_1, window_bounds = array<i64: 2, 8>}, {transform_indices = @transform_2, window_bounds = array<i64: 2, 32>}]} {
    %c0_i32 = arith.constant 0 : i32
    %0 = arith.cmpi eq, %arg1, %c0_i32 : i32
    %1 = arith.extui %0 : i1 to i32
    %c0_i32_0 = arith.constant 0 : i32
    %2 = arith.cmpi ne, %1, %c0_i32_0 : i32
    scf.if %2 {
      %cst_16 = arith.constant 0.000000e+00 : f32
      %20 = vector.broadcast %cst_16 : f32 to vector<2x32xf32>
      %c0_17 = arith.constant 0 : index
      %c0_18 = arith.constant 0 : index
      %21 = vector.load %arg5[%c0_17, %c0_18] : memref<2x32xf32, #tpu.memory_space<vmem>>, vector<2x32xf32>
      tpu.vector_store %arg5[%c0_17, %c0_18], %20 {strides = array<i32>} : memref<2x32xf32, #tpu.memory_space<vmem>>, vector<2x32xf32>,
      %cst_19 = arith.constant 0.000000e+00 : f32
      %22 = vector.broadcast %cst_19 : f32 to vector<2x1xf32>
      %c0_20 = arith.constant 0 : index
      %c0_21 = arith.constant 0 : index
      %23 = vector.load %arg6[%c0_20, %c0_21] : memref<2x1xf32, #tpu.memory_space<vmem>>, vector<2x1xf32>
      tpu.vector_store %arg6[%c0_20, %c0_21], %22 {strides = array<i32>} : memref<2x1xf32, #tpu.memory_space<vmem>>, vector<2x1xf32>,
    } else {
    }
    %c0 = arith.constant 0 : index
    %c0_1 = arith.constant 0 : index
    %c0_2 = arith.constant 0 : index
    %3 = vector.load %arg2[%c0, %c0_1, %c0_2] : memref<2x8x32xf32, #tpu.memory_space<vmem>>, vector<2x8x32xf32>
    %c0_3 = arith.constant 0 : index
    %c0_4 = arith.constant 0 : index
    %4 = vector.load %arg3[%c0_3, %c0_4] : memref<2x8xf32, #tpu.memory_space<vmem>>, vector<2x8xf32>
    %c0_5 = arith.constant 0 : index
    %c0_6 = arith.constant 0 : index
    %5 = vector.load %arg5[%c0_5, %c0_6] : memref<2x32xf32, #tpu.memory_space<vmem>>, vector<2x32xf32>
    %6 = vector.shape_cast %4 : vector<2x8xf32> to vector<2x8x1xf32>
    %7 = vector.broadcast %6 : vector<2x8x1xf32> to vector<2x8x32xf32>
    %8 = arith.mulf %3, %7 : vector<2x8x32xf32>
    %cst = arith.constant dense<0.000000e+00> : vector<2x32xf32>
    %9 = vector.multi_reduction <add>, %8, %cst [1] : vector<2x8x32xf32> to vector<2x32xf32>
    %10 = arith.addf %5, %9 : vector<2x32xf32>
    %c0_7 = arith.constant 0 : index
    %c0_8 = arith.constant 0 : index
    %11 = vector.load %arg5[%c0_7, %c0_8] : memref<2x32xf32, #tpu.memory_space<vmem>>, vector<2x32xf32>
    tpu.vector_store %arg5[%c0_7, %c0_8], %10 {strides = array<i32>} : memref<2x32xf32, #tpu.memory_space<vmem>>, vector<2x32xf32>,
    %c0_9 = arith.constant 0 : index
    %c0_10 = arith.constant 0 : index
    %12 = vector.load %arg6[%c0_9, %c0_10] : memref<2x1xf32, #tpu.memory_space<vmem>>, vector<2x1xf32>
    %cst_11 = arith.constant dense<0.000000e+00> : vector<2xf32>
    %13 = vector.multi_reduction <add>, %4, %cst_11 [1] : vector<2x8xf32> to vector<2xf32>
    %14 = vector.shape_cast %13 : vector<2xf32> to vector<2x1xf32>
    %15 = arith.addf %12, %14 : vector<2x1xf32>
    %c0_12 = arith.constant 0 : index
    %c0_13 = arith.constant 0 : index
    %16 = vector.load %arg6[%c0_12, %c0_13] : memref<2x1xf32, #tpu.memory_space<vmem>>, vector<2x1xf32>
    tpu.vector_store %arg6[%c0_12, %c0_13], %15 {strides = array<i32>} : memref<2x1xf32, #tpu.memory_space<vmem>>, vector<2x1xf32>,
    %c0_i32_14 = arith.constant 0 : i32
    %17 = arith.cmpi eq, %arg1, %c0_i32_14 : i32
    %18 = arith.extui %17 : i1 to i32
    %c0_i32_15 = arith.constant 0 : i32
    %19 = arith.cmpi ne, %18, %c0_i32_15 : i32
    scf.if %19 {
      %c0_16 = arith.constant 0 : index
      %c0_17 = arith.constant 0 : index
      %20 = vector.load %arg6[%c0_16, %c0_17] : memref<2x1xf32, #tpu.memory_space<vmem>>, vector<2x1xf32>
      %cst_18 = arith.constant 9.99999971E-10 : f32
      %21 = vector.broadcast %cst_18 : f32 to vector<2x1xf32>
      %22 = arith.maximumf %20, %21 : vector<2x1xf32>
      %23 = tpu.reciprocal %22 : vector<2x1xf32> -> vector<2x1xf32>
      %c0_19 = arith.constant 0 : index
      %c0_20 = arith.constant 0 : index
      %24 = vector.load %arg5[%c0_19, %c0_20] : memref<2x32xf32, #tpu.memory_space<vmem>>, vector<2x32xf32>
      %25 = vector.broadcast %23 : vector<2x1xf32> to vector<2x32xf32>
      %26 = arith.mulf %24, %25 : vector<2x32xf32>
      %c0_21 = arith.constant 0 : index
      %c0_22 = arith.constant 0 : index
      %27 = vector.load %arg4[%c0_21, %c0_22] : memref<2x32xf32, #tpu.memory_space<vmem>>, vector<2x32xf32>
      tpu.vector_store %arg4[%c0_21, %c0_22], %26 {strides = array<i32>} : memref<2x32xf32, #tpu.memory_space<vmem>>, vector<2x32xf32>,
    } else {
    }
    return
  }
  func.func @transform_0(%arg0: i32, %arg1: i32) -> (i32, i32, i32) {
    %c0_i32 = arith.constant 0 : i32
    %c0_i32_0 = arith.constant 0 : i32
    return %arg0, %arg1, %c0_i32 : i32, i32, i32
  }
  func.func @transform_1(%arg0: i32, %arg1: i32) -> (i32, i32) {
    %c0_i32 = arith.constant 0 : i32
    return %arg0, %arg1 : i32, i32
  }
  func.func @transform_2(%arg0: i32, %arg1: i32) -> (i32, i32) {
    %c0_i32 = arith.constant 0 : i32
    %c0_i32_0 = arith.constant 0 : i32
    return %arg0, %c0_i32 : i32, i32
  }
}

</mosaic_0001>

<bundles_post_ra>
// kernel: tpu_custom_call.1
= control target key start
LH: loop header
LB: loop body
LE: loop exit
PB: predicated region body
PF: predicated region fallthrough
CT: control target
= control target key end

     0   :  { %7 = vsyncpa [#allocation5], 0  ;;  %s225_s0 = inlined_call_operand.hbm [shape: f32[2,8,32], index: 0, kind: input, shape index: {}]   ;;  %s226_s1 = inlined_call_operand.vmem [shape: f32[2,8], index: 1, kind: input, shape index: {}]   ;;  %s227_s2 = inlined_call_operand.hbm [shape: f32[2,32], index: 2, kind: output, shape index: {}]  }
   0x1   :  { %8 = vsyncpa [#allocation6], 0  ;;  %s172_s9 = smov [#allocation4]   ;;  %s124_s13 = scalar_lea.hbm %s225_s0, 256 }
   0x2   :  { %s14_s10 = sshll.u32 %s172_s9, 4  ;;  %p125_p0 = scmp.ne.s32.totalorder %s225_s0, %s124_s13  ;;  %s15_s10 = int_to_ptr.vmem [resolvable:$true] %s14_s10 }
   0x3   :  { %p128_p1 = scmp.lt.u32.totalorder %s124_s13, %s225_s0 }
   0x5   :  { %p130_p2 = pnand %p128_p1, %p125_p0 }
   0x7   :  { %133 = shalt.err (!%p130_p2)
}
   0x8   :  { %s134_s18 = scalar_lea.vmem %s15_s10, 256  ;;  %p139_p4 = scmp.lt.s32.totalorder %s15_s10, %s15_s10 }
   0x9   :  { %p135_p3 = scmp.ne.s32.totalorder %s15_s10, %s134_s18  ;;  %p140_p5 = scmp.lt.s32.totalorder %s134_s18, %s134_s18 }
   0xb   :  { %p141_p6 = por %p140_p5, %p139_p4 }
   0xd   :  { %p142_p7 = pnand %p141_p6, %p135_p3 }
   0xf   :  { %145 = shalt.err (!%p142_p7)
}
  0x10   :  { %s173_s19 = smov 128   ;;  %s174_s20 = smov 8  }
  0x11   :  { %20 = dma.hbm_to_vmem [thread:$0]  %s225_s0, 256, %s15_s10, [#allocation5], %s173_s19, %s173_s19, %s174_s20  }
  0x12   :  { %168 = dma.done.wait [#allocation5], 256  }
  0x13   :  { %169 = vsyncadd [#allocation5], 4294967040  ;;  %vm32_vm0 = vcmask 1024   ;;  %v175_v0 = vmov 0.0   ;;  %vm78_vm1 = vcmask 58368   ;;  %v38_v3 = vlaneseq  ;;  %v35_v10 = vld [vmem:[#allocation4 + $0x8] sm:$0xff] }
  0x14   :  { %33 = vst.msk [vmem:[#allocation3] sm:$0x3] %vm32_vm0, %v175_v0  ;;  %v36_v1 = vld [vmem:[%s226_s1] sm:$0x3]  ;;  %v176_v8 = vmov 0   ;;  %vm30_vm2 = vcmask 254976  }
  0x15   :  { %v79_v2 = vsel %vm78_vm1, %v36_v1, 0.0  ;;  %v39_v4 = vshrl.u32 %v38_v3, 7  ;;  %120 = vset.pattern.permute.xlu1 %v176_v8  ;;  %121 = vset.pattern.permute.xlu0 %v176_v8  ;;  %31 = vst.msk [vmem:[#allocation2] sm:$0x3] %vm30_vm2, %v175_v0  ;;  %vm54_vm3 = vcmask 261120   ;;  %v34_v19 = vld [vmem:[#allocation4] sm:$0xff] }
  0x16   :  { %80 = vadd.xlane.f32.xlu0 %v79_v2  ;;  %vm71_vm4 = vcmask 1041409   ;;  %s177_s0 = smov [#allocation7]  }
  0x17   :  { %v47_v5 = vsub.s32 1, %v39_v4  ;;  %v40_v6 = vsub.s32 0, %v39_v4  ;;  %s105_s1 = sshll.u32 %s177_s0, 4  ;;  %s106_s1 = int_to_ptr.vmem [resolvable:$true] %s105_s1 }
  0x18   :  { %s146_s25 = scalar_lea.vmem %s106_s1, 32  ;;  %p151_p9 = scmp.lt.s32.totalorder %s106_s1, %s106_s1 }
  0x19   :  { %v48_v7 = vrot.slane %v36_v1, %v47_v5  ;;  %v41_v9 = vrot.slane %v36_v1, %v40_v6  ;;  %p147_p8 = scmp.ne.s32.totalorder %s106_s1, %s146_s25  ;;  %p152_p10 = scmp.lt.s32.totalorder %s146_s25, %s146_s25 }
  0x1b   :  { %50 = vbcast.lane.b32.xlu1 %v48_v7, 256  ;;  %v77_v15 = vld [vmem:[#allocation3] sm:$0x3]  ;;  %p153_p11 = por %p152_p10, %p151_p9 }
  0x1c   :  { %v37_v35 = vld [vmem:[#allocation2] sm:$0x3] }
  0x1d   :  { %p154_p12 = pnand %p153_p11, %p147_p8 }
  0x2c   :  { %43 = vbcast.lane.b32.xlu0 %v41_v9, 256 }
  0x8d   :  { %v51_v11 = vpop.permute.xlu1 %50 }
  0x8e   :  { %v53_v12 = vmul.f32 %v51_v11, %v35_v10 }
  0x90   :  { %v62_v13 = vsel %vm54_vm3, %v53_v12, 0.0 }
  0x91   :  { %v63_v14 = vrot.slane %v62_v13, 4 }
  0x93   :  { %v64_v17 = vadd.f32 %v63_v14, %v62_v13 }
  0x95   :  { %v65_v20 = vrot.slane %v64_v17, 2 }
  0x97   :  { %v66_v24 = vadd.f32 %v65_v20, %v64_v17 }
  0x99   :  { %v67_v29 = vrot.slane %v66_v24, 1 }
  0x9b   :  { %v68_v32 = vadd.f32 %v67_v29, %v66_v24 }
  0xa3   :  { %v81_v16 = vpop.xlane.xlu0 %80 }
  0xa4   :  { %v82_v18 = vadd.f32 %v81_v16, %v77_v15 }
  0xa6   :  { %84 = vst.msk [vmem:[#allocation3] sm:$0x3] %vm32_vm0, %v82_v18 }
  0xa7   :  { %v44_v21 = vpop.permute.xlu0 %43 }
  0xa8   :  { %v52_v22 = vmul.f32 %v44_v21, %v34_v19 }
  0xaa   :  { %v55_v23 = vsel %vm54_vm3, %v52_v22, 0.0 }
  0xab   :  { %v56_v25 = vrot.slane %v55_v23, 4 }
  0xad   :  { %v88_v26 = vld [vmem:[#allocation3] sm:$0x3]  ;;  %v57_v27 = vadd.f32 %v56_v25, %v55_v23 }
  0xae   :  { %v89_v28 = vmax.f32 %v88_v26, 1e-09 }
  0xaf   :  { %v58_v30 = vrot.slane %v57_v27, 2 }
  0xb0   :  { %122 = vrcp.f32 %v89_v28 }
  0xb1   :  { %v59_v31 = vadd.f32 %v58_v30, %v57_v27 }
  0xb3   :  { %v60_v33 = vrot.slane %v59_v31, 1 }
  0xb5   :  { %v61_v34 = vadd.f32 %v60_v33, %v59_v31 }
  0xb7   :  { %v72_v36 = vsel %vm71_vm4, %v68_v32, %v61_v34 }
  0xb8   :  { %v74_v37 = vadd.f32 %v72_v36, %v37_v35 }
  0xba   :  { %v123_v38 = vpop.eup %122  ;;  %76 = vst.msk [vmem:[#allocation2] sm:$0x3] %vm30_vm2, %v74_v37 }
  0xbb   :  { %94 = vperm.xlu1 %120, %v123_v38  }
  0xc1   :  { %v91_v40 = vld [vmem:[#allocation2] sm:$0x3] }
 0x13a   :  { %v95_v39 = vpop.permute.xlu1 %94 }
 0x13b   :  { %v97_v41 = vmul.f32 %v95_v39, %v91_v40 }
 0x13d   :  { %98 = vst.msk [vmem:[#allocation7] sm:$0x3] %vm30_vm2, %v97_v41 }
 0x13e   :  { %157 = shalt.err (!%p154_p12)
}
 0x13f   :  { %s158_s28 = scalar_lea.hbm %s227_s2, 32 }
 0x140   :  { %p159_p13 = scmp.ne.s32.totalorder %s227_s2, %s158_s28  ;;  %p162_p0 = scmp.lt.u32.totalorder %s158_s28, %s227_s2 }
 0x142   :  { %p164_p1 = pnand %p162_p0, %p159_p13 }
 0x144   :  { %167 = shalt.err (!%p164_p1)
}
 0x145   :  { %108 = dma.vmem_to_hbm [thread:$0]  %s106_s1, 32, %s227_s2, [#allocation6]  }
 0x146   :  { %170 = dma.done.wait [#allocation6], 32  }
 0x147   :  { %171 = vsyncadd [#allocation6], 4294967264 }
 0x148   :  { %112 = vsyncpa [#allocation5], 1 }
 0x149   :  { %113 = vsyncpa [#allocation6], 1 }

</bundles_post_ra>
